<compile_context>
chip_gen: v6e
topology: v6e:2x2x1
jax: 0.10.0
libtpu: 0.0.40
codegen_flags: <defaults>
</compile_context>

<pallas_src>
import math

import jax
import jax.numpy as jnp
from jax.experimental import pallas as pl
from jax.experimental.pallas import tpu as pltpu


def _silhouette_kernel(pred_ref, gt_ref, out_ref):
    # Pure elementwise |pred - gt| on the whole VMEM tile (VPU op).
    out_ref[...] = jnp.abs(pred_ref[...] - gt_ref[...])


_TARGET_BLOCK_BYTES = 4 * 1024 * 1024    # ~4 MiB per operand block
_SINGLE_BLOCK_BYTES = 4 * 1024 * 1024    # single-TC fast path: one block per call
_VMEM_LIMIT_BYTES = 32 * 1024 * 1024     # safe on v5e / v6e / v7x (24 MiB live w/ 4 MiB blocks)
_MULTI_CORE_MIN_STEPS = 8                # >= 4 pipelined steps per TensorCore on dual-TC chips


def _tensorcores_per_chip() -> int:
    """Best-effort TensorCore count per chip (v7x has 2; v5e/v6e have 1)."""
    try:
        dev = jax.devices()[0]
        kind = (getattr(dev, "device_kind", "") or "").lower()
        if "v7" in kind:
            return 2
        num_cores = getattr(dev, "num_cores", None)
        if isinstance(num_cores, int) and num_cores > 0:
            return num_cores
    except Exception:
        pass
    return 1


def _pick_lane_width(total: int, pack: int):
    """Pick a lane width L: a 128-multiple divisor of `total` (reshape is metadata-only).

    Prefers a moderate width (<= 2048) that keeps rows >= 4*pack so block-row
    granularity stays fine enough for balanced grids; otherwise uses the narrowest
    divisor (maximizing rows). Returns None if `total` is not a multiple of 128.
    """
    divisors = [l for l in (8192, 4096, 2048, 1024, 512, 256, 128) if total % l == 0]
    if not divisors:
        return None
    for lanes in divisors:
        if lanes <= 2048 and total // lanes >= 4 * pack:
            return lanes
    return divisors[-1]


def silhouette_loss(mask_pred: jax.Array, mask_gt: jax.Array, *, donate_pred: bool = False) -> jax.Array:
    """Pallas equivalent of SilhouetteLoss.forward: returns |mask_pred - mask_gt|."""
    assert mask_pred.shape == mask_gt.shape, "shapes must match (module never broadcasts)"
    assert mask_pred.dtype == mask_gt.dtype

    orig_shape = mask_pred.shape
    dtype = mask_pred.dtype
    itemsize = jnp.dtype(dtype).itemsize
    total = math.prod(orig_shape) if orig_shape else 1

    # Zero-sized input: nothing to do (0-sized blocks would fail lowering).
    if total == 0:
        return jnp.abs(mask_pred - mask_gt)

    # Sublane packing for block-row granularity (f32: 8, bf16: 16, int8: 32).
    pack = 8 * max(1, 4 // itemsize)

    lanes = _pick_lane_width(total, pack)
    if lanes is None:
        # Element count not a multiple of 128: XLA's fused elementwise already hits
        # the HBM roofline; padding + slicing would add extra full-array HBM passes.
        return jnp.abs(mask_pred - mask_gt)

    rows = total // lanes
    pred2d = mask_pred.reshape(rows, lanes)
    gt2d = mask_gt.reshape(rows, lanes)

    # --- Block sizing, gated on chip generation ------------------------------
    num_cores = _tensorcores_per_chip()
    total_bytes = total * itemsize

    if num_cores <= 1 and total_bytes <= _SINGLE_BLOCK_BYTES:
        # Single TensorCore + fits the block budget: one full-extent block, no
        # tiling / pipeline / per-step overhead (grid would only be a serial loop).
        tm = rows
    else:
        tm = max(pack, (_TARGET_BLOCK_BYTES // (lanes * itemsize)) // pack * pack)
        tm = min(tm, rows)
        if num_cores > 1:
            # Dual-TC (v7x): keep enough steps that each core gets >= 4 pipelined
            # iterations (prefetch / compute / writeback overlap on both cores).
            if pl.cdiv(rows, tm) < _MULTI_CORE_MIN_STEPS and rows >= _MULTI_CORE_MIN_STEPS * pack:
                tm = max(pack, (rows // _MULTI_CORE_MIN_STEPS) // pack * pack)

    grid = (pl.cdiv(rows, tm),)

    out2d = pl.pallas_call(
        _silhouette_kernel,
        out_shape=jax.ShapeDtypeStruct((rows, lanes), dtype),
        grid_spec=pltpu.PrefetchScalarGridSpec(
            num_scalar_prefetch=0,
            grid=grid,
            in_specs=[
                pl.BlockSpec((tm, lanes), lambda i: (i, 0)),
                pl.BlockSpec((tm, lanes), lambda i: (i, 0)),
            ],
            out_specs=pl.BlockSpec((tm, lanes), lambda i: (i, 0)),
        ),
        compiler_params=pltpu.CompilerParams(
            dimension_semantics=("parallel",),
            vmem_limit_bytes=_VMEM_LIMIT_BYTES,
        ),
        # Only alias when the caller actually donates mask_pred; otherwise XLA
        # would insert a defensive copy (an extra HBM pass).
        input_output_aliases=({0: 0} if donate_pred else {}),
    )(pred2d, gt2d)

    return out2d.reshape(orig_shape)


if __name__ == "__main__":
    key = jax.random.PRNGKey(0)
    k1, k2, k3, k4, k5, k6 = jax.random.split(key, 6)

    # NCHW, small shapes consistent with the module: batch=2, channels=4, spatial=16x16.
    shape = (2, 4, 16, 16)
    mask_pred = jax.random.uniform(k1, shape, dtype=jnp.float32)
    mask_gt = (jax.random.uniform(k2, shape, dtype=jnp.float32) > 0.5).astype(jnp.float32)

    loss = silhouette_loss(mask_pred, mask_gt)
    jax.block_until_ready(loss)
    assert loss.shape == shape
    assert loss.dtype == mask_pred.dtype
    assert jnp.allclose(loss, jnp.abs(mask_pred - mask_gt), atol=0.0, rtol=0.0)

    # Non-128-divisible element count -> jnp fallback path (no pad/slice copies).
    shape2 = (3, 5, 7)
    a = jax.random.uniform(k3, shape2, dtype=jnp.float32)
    b = (jax.random.uniform(k4, shape2, dtype=jnp.float32) > 0.5).astype(jnp.float32)
    loss2 = silhouette_loss(a, b)
    jax.block_until_ready(loss2)
    assert loss2.shape == shape2
    assert jnp.allclose(loss2, jnp.abs(a - b), atol=0.0, rtol=0.0)

    # Slightly larger divisible shape (still small) to exercise the moderate lane width.
    shape3 = (4, 1, 128, 128)
    c = jax.random.uniform(k5, shape3, dtype=jnp.float32)
    d = (jax.random.uniform(k6, shape3, dtype=jnp.float32) > 0.5).astype(jnp.float32)
    loss3 = silhouette_loss(c, d)
    jax.block_until_ready(loss3)
    assert loss3.shape == shape3
    assert jnp.allclose(loss3, jnp.abs(c - d), atol=0.0, rtol=0.0)

    print("KERNEL_OK")
</pallas_src>

<mosaic_0001>
module attributes {stable_mosaic.version = 11 : i64} {
  func.func @_silhouette_kernel(%arg0: i32, %arg1: memref<16x128xf32, #tpu.memory_space<vmem>>, %arg2: memref<16x128xf32, #tpu.memory_space<vmem>>, %arg3: memref<16x128xf32, #tpu.memory_space<vmem>>) attributes {dimension_semantics = [#tpu.dimension_semantics<parallel>], iteration_bounds = array<i64: 1>, scalar_prefetch = 0 : i64, scratch_operands = 0 : i64, tpu.core_type = #tpu.core_type<tc>, window_params = [{transform_indices = @transform_0, window_bounds = array<i64: 16, 128>}, {transform_indices = @transform_1, window_bounds = array<i64: 16, 128>}, {transform_indices = @transform_2, window_bounds = array<i64: 16, 128>}]} {
    %c0 = arith.constant 0 : index
    %c0_0 = arith.constant 0 : index
    %0 = vector.load %arg1[%c0, %c0_0] : memref<16x128xf32, #tpu.memory_space<vmem>>, vector<16x128xf32>
    %c0_1 = arith.constant 0 : index
    %c0_2 = arith.constant 0 : index
    %1 = vector.load %arg2[%c0_1, %c0_2] : memref<16x128xf32, #tpu.memory_space<vmem>>, vector<16x128xf32>
    %2 = arith.subf %0, %1 : vector<16x128xf32>
    %3 = math.absf %2 : vector<16x128xf32>
    %c0_3 = arith.constant 0 : index
    %c0_4 = arith.constant 0 : index
    %4 = vector.load %arg3[%c0_3, %c0_4] : memref<16x128xf32, #tpu.memory_space<vmem>>, vector<16x128xf32>
    tpu.vector_store %arg3[%c0_3, %c0_4], %3 {strides = array<i32>} : memref<16x128xf32, #tpu.memory_space<vmem>>, vector<16x128xf32>,
    return
  }
  func.func @transform_0(%arg0: i32) -> (i32, i32) {
    %c0_i32 = arith.constant 0 : i32
    %c0_i32_0 = arith.constant 0 : i32
    return %arg0, %c0_i32 : i32, i32
  }
  func.func @transform_1(%arg0: i32) -> (i32, i32) {
    %c0_i32 = arith.constant 0 : i32
    %c0_i32_0 = arith.constant 0 : i32
    return %arg0, %c0_i32 : i32, i32
  }
  func.func @transform_2(%arg0: i32) -> (i32, i32) {
    %c0_i32 = arith.constant 0 : i32
    %c0_i32_0 = arith.constant 0 : i32
    return %arg0, %c0_i32 : i32, i32
  }
}

</mosaic_0001>

<bundles_post_ra>
// kernel: tpu_custom_call.1
= control target key start
LH: loop header
LB: loop body
LE: loop exit
PB: predicated region body
PF: predicated region fallthrough
CT: control target
= control target key end

     0   :  { %7 = vsyncpa [#allocation3], 0  ;;  %s177_s0 = inlined_call_operand.hbm [shape: f32[16,128], index: 0, kind: input, shape index: {}]   ;;  %s178_s1 = inlined_call_operand.hbm [shape: f32[16,128], index: 1, kind: input, shape index: {}]   ;;  %s179_s2 = inlined_call_operand.hbm [shape: f32[16,128], index: 2, kind: output, shape index: {}]  }
   0x1   :  { %8 = vsyncpa [#allocation6], 0 }
   0x2   :  { %9 = vsyncpa [#allocation4], 0  ;;  %s139_s9 = smov [#allocation2]  }
   0x3   :  { %s15_s10 = sshll.u32 %s139_s9, 4  ;;  %s16_s10 = int_to_ptr.vmem [resolvable:$true] %s15_s10 }
   0x4   :  { %s81_s11 = scalar_lea.vmem %s16_s10, 256  ;;  %p86_p1 = scmp.lt.s32.totalorder %s16_s10, %s16_s10 }
   0x5   :  { %p82_p0 = scmp.ne.s32.totalorder %s16_s10, %s81_s11  ;;  %p87_p2 = scmp.lt.s32.totalorder %s81_s11, %s81_s11 }
   0x7   :  { %p88_p3 = por %p87_p2, %p86_p1 }
   0x9   :  { %p89_p4 = pnand %p88_p3, %p82_p0 }
   0xb   :  { %92 = shalt.err (!%p89_p4)
}
   0xc   :  { %s140_s12 = smov 128   ;;  %s141_s13 = smov 8  }
   0xd   :  { %21 = dma.hbm_to_vmem [thread:$0]  %s177_s0, 256, %s16_s10, [#allocation3], %s140_s12, %s140_s12, %s141_s13  }
   0xe   :  { %s142_s16 = smov [#allocation5]  }
   0xf   :  { %s27_s17 = sshll.u32 %s142_s16, 4  ;;  %s28_s17 = int_to_ptr.vmem [resolvable:$true] %s27_s17 }
  0x10   :  { %s101_s18 = scalar_lea.vmem %s28_s17, 256  ;;  %p106_p6 = scmp.lt.s32.totalorder %s28_s17, %s28_s17 }
  0x11   :  { %p102_p5 = scmp.ne.s32.totalorder %s28_s17, %s101_s18  ;;  %p107_p7 = scmp.lt.s32.totalorder %s101_s18, %s101_s18 }
  0x13   :  { %p108_p8 = por %p107_p7, %p106_p6 }
  0x15   :  { %p109_p9 = pnand %p108_p8, %p102_p5 }
  0x17   :  { %112 = shalt.err (!%p109_p9)
}
  0x18   :  { %33 = dma.hbm_to_vmem [thread:$0]  %s178_s1, 256, %s28_s17, [#allocation6], %s140_s12, %s140_s12, %s141_s13  }
  0x19   :  { %133 = dma.done.wait [#allocation3], 256  }
  0x1a   :  { %134 = vsyncadd [#allocation3], 4294967040 }
  0x1b   :  { %135 = dma.done.wait [#allocation6], 256  }
  0x1c   :  { %136 = vsyncadd [#allocation6], 4294967040  ;;  %v40_v0 = vld [vmem:[#allocation2] sm:$0xff]  ;;  %v42_v1 = vld [vmem:[#allocation5] sm:$0xff]  ;;  %s143_s0 = smov [#allocation7]  }
  0x1d   :  { %v41_v2 = vld [vmem:[#allocation2 + $0x8] sm:$0xff]  ;;  %v44_v3 = vsub.f32 %v40_v0, %v42_v1  ;;  %v43_v4 = vld [vmem:[#allocation5 + $0x8] sm:$0xff]  ;;  %s55_s21 = sshll.u32 %s143_s0, 4  ;;  %s56_s21 = int_to_ptr.vmem [resolvable:$true] %s55_s21 }
  0x1e   :  { %v45_v5 = vsub.f32 %v41_v2, %v43_v4  ;;  %s113_s22 = scalar_lea.vmem %s56_s21, 256  ;;  %p118_p11 = scmp.lt.s32.totalorder %s56_s21, %s56_s21 }
  0x1f   :  { %v46_v6 = vand.u32 2147483647, %v44_v3  ;;  %p114_p10 = scmp.ne.s32.totalorder %s56_s21, %s113_s22  ;;  %p119_p12 = scmp.lt.s32.totalorder %s113_s22, %s113_s22 }
  0x20   :  { %v47_v7 = vand.u32 2147483647, %v45_v5 }
  0x21   :  { %48 = vst [vmem:[#allocation7] sm:$0xff] %v46_v6  ;;  %p120_p13 = por %p119_p12, %p118_p11 }
  0x22   :  { %49 = vst [vmem:[#allocation7 + $0x8] sm:$0xff] %v47_v7 }
  0x23   :  { %p121_p0 = pnand %p120_p13, %p114_p10 }
  0x25   :  { %124 = shalt.err (!%p121_p0)
}
  0x26   :  { %61 = dma.vmem_to_hbm [thread:$0]  %s56_s21, 256, %s179_s2, [#allocation4], %s140_s12, %s140_s12, %s141_s13  }
  0x27   :  { %137 = dma.done.wait [#allocation4], 256  }
  0x28   :  { %138 = vsyncadd [#allocation4], 4294967040 }
  0x29   :  { %65 = vsyncpa [#allocation3], 1 }
  0x2a   :  { %66 = vsyncpa [#allocation6], 1 }
  0x2b   :  { %67 = vsyncpa [#allocation4], 1 }

</bundles_post_ra>
